<compile_context>
chip_gen: v7x
topology: tpu7x:2x2x1
jax: 0.10.0
libtpu: 0.0.40
codegen_flags: <defaults>
</compile_context>

<pallas_src>
import jax
import jax.numpy as jnp
from jax import lax
from jax.experimental import pallas as pl
from jax.experimental.pallas import tpu as pltpu

# Module hyper-parameters (small, consistent with StockLSTM(input_size=1, output_size=1, ...))
INPUT_SIZE = 1
OUTPUT_SIZE = 1
HIDDEN = 32
LAYERS = 2
BATCH = 2
SEQ = 8
I_PAD = 8     # padded input feature dim: col 0 = x, col 1 = ones (bias), rest zero
B_PAD = 8     # padded batch dim (zeros) so per-step vregs/stores use the full 8-sublane tile
O_PAD = 128   # lane-dense fc head output width (wrapper slices [:, :OUTPUT_SIZE])


def stock_lstm_kernel(x_ref, win_ref, wrec_ref, wfc_ref, state_in_ref,
                      out_ref, state_out_ref,
                      gx_ref, seq_ref):
    T, Bp, H = SEQ, B_PAD, HIDDEN
    H2, H6 = 2 * H, 6 * H

    # ---- hoisted input-to-gate projection for ALL T+1 fused steps (biases folded via ones col) ----
    # gx[s] lanes: layer-0 gate lanes get b0 + x_s @ wih0 ; layer-1 gate lanes get b1 (constant).
    gx_ref[...] = jnp.dot(x_ref[...], win_ref[...], preferred_element_type=jnp.float32)

    w_rec = wrec_ref[...]  # (2H, 8H) block recurrent matrix, loaded once

    def fused_step(s, h_pack, c_pack):
        """One wavefront step: layer-0 t=s and layer-1 t=s-1 fused in one matmul.
        h_pack/c_pack: (Bp, 2H) = [layer0 | layer1]."""
        r = pl.multiple_of(s * Bp, Bp)
        gates = gx_ref[pl.ds(r, Bp), :] + jnp.dot(h_pack, w_rec,
                                                  preferred_element_type=jnp.float32)
        sig = jax.nn.sigmoid(gates[:, :H6])       # one EUP push: [i0 i1 | f0 f1 | o0 o1]
        g = jnp.tanh(gates[:, H6:])               # one EUP push: [g0 g1]
        i = sig[:, 0:H2]
        f = sig[:, H2:2 * H2]
        o = sig[:, 2 * H2:3 * H2]
        c_new = f * c_pack + i * g
        h_new = o * jnp.tanh(c_new)
        return h_new, c_new

    # Lane mask: which lanes of the packed (Bp, 2H) state belong to layer 0.
    is_l0 = lax.broadcasted_iota(jnp.int32, (Bp, H2), 1) < H

    h_pack = state_in_ref[0]
    c_pack = state_in_ref[1]

    # ---- prologue (fused step 0): only layer-0 timestep 0 is valid ----
    h_new, c_new = fused_step(0, h_pack, c_pack)
    h_pack = jnp.where(is_l0, h_new, h_pack)
    c_pack = jnp.where(is_l0, c_new, c_pack)

    # ---- steady state: fused steps 1 .. T-1 (layer-0 t=s, layer-1 t=s-1), fully unrolled ----
    def body(s, carry):
        h_p, c_p = carry
        h_p, c_p = fused_step(s, h_p, c_p)
        r = pl.multiple_of((s - 1) * Bp, Bp)
        seq_ref[pl.ds(r, Bp), :] = h_p            # layer-1 half of this row block is h1_{s-1}
        return (h_p, c_p)

    h_pack, c_pack = lax.fori_loop(1, T, body, (h_pack, c_pack), unroll=True)

    # ---- epilogue (fused step T): only layer-1 timestep T-1 is valid ----
    h_new, c_new = fused_step(T, h_pack, c_pack)
    h_fin = jnp.where(is_l0, h_pack, h_new)
    c_fin = jnp.where(is_l0, c_pack, c_new)
    r = pl.multiple_of((T - 1) * Bp, Bp)
    seq_ref[pl.ds(r, Bp), :] = h_fin              # layer-1 half = h1_{T-1}
    state_out_ref[0] = h_fin
    state_out_ref[1] = c_fin

    # TODO(synk): nn.LSTM inter-layer dropout (p=0.25) is train-only; inference path omits it.

    # ---- fc head: one lane-dense matmul over every timestep.
    # Layer-0 rows of wfc are zero, so only the layer-1 halves of seq contribute.
    out_ref[...] = (jnp.dot(seq_ref[...], wfc_ref[:H2, :], preferred_element_type=jnp.float32)
                    + wfc_ref[H2:H2 + 1, :])


def stock_lstm_forward(data_btI, params, hidden):
    """data_btI: (B, T, INPUT_SIZE) batch-first, like PyTorch. Returns (out (B,T,O), (h_n, c_n))."""
    wih0, whh0, b0, wih1, whh1, b1, wfc, bfc = params
    h0, c0 = hidden
    B, T, I = data_btI.shape
    H = HIDDEN
    Bp = B_PAD
    assert T == SEQ and I == INPUT_SIZE and B <= B_PAD

    def scatter_gates(w, layer):
        """Map (rows, 4H) PyTorch-order [i,f,g,o] columns into the fused 8H layout
        [ i0 i1 | f0 f1 | o0 o1 | g0 g1 ] for the given layer, zeros elsewhere."""
        w = w.astype(jnp.float32)
        i_, f_, g_, o_ = w[:, :H], w[:, H:2 * H], w[:, 2 * H:3 * H], w[:, 3 * H:]
        z = jnp.zeros_like(i_)
        if layer == 0:
            blocks = (i_, z, f_, z, o_, z, g_, z)
        else:
            blocks = (z, i_, z, f_, z, o_, z, g_)
        return jnp.concatenate(blocks, axis=1)

    # ---- packed input-to-gate weights (+ folded biases) for the hoisted projection ----
    win = jnp.zeros((I_PAD, 8 * H), jnp.float32)
    win = win.at[0:I, :].set(scatter_gates(wih0, 0))                     # x column(s)
    bias_row = scatter_gates(b0, 0) + scatter_gates(b1, 1)               # (1, 8H)
    win = win.at[I:I + 1, :].set(bias_row)                               # ones-column -> bias row

    # ---- block recurrent matrix: [[whh0 -> l0 gates, wih1 -> l1 gates], [0, whh1 -> l1 gates]] ----
    wrec = jnp.concatenate([
        scatter_gates(whh0, 0) + scatter_gates(wih1, 1),                 # (H, 8H)
        scatter_gates(whh1, 1),                                          # (H, 8H)
    ], axis=0)                                                           # (2H, 8H)

    # ---- fc head: zero layer-0 rows, lane-padded to O_PAD, bias as last row ----
    wfc_pad = jnp.zeros((2 * H + 1, O_PAD), jnp.float32)
    wfc_pad = wfc_pad.at[H:2 * H, :OUTPUT_SIZE].set(wfc.astype(jnp.float32))
    wfc_pad = wfc_pad.at[2 * H:2 * H + 1, :OUTPUT_SIZE].set(bfc.astype(jnp.float32))

    # ---- input: time-major, batch padded to Bp, feature padded to I_PAD, ones column at index I,
    #      plus one extra zero timestep block that feeds the epilogue fused step (gives pure bias) ----
    x_tm = jnp.transpose(data_btI, (1, 0, 2)).astype(jnp.float32)        # (T, B, I)
    x_tm = jnp.pad(x_tm, ((0, 1), (0, Bp - B), (0, I_PAD - I)))          # (T+1, Bp, I_PAD)
    x_tm = x_tm.at[:, :, I].set(1.0)                                     # ones column -> bias row
    x2d = x_tm.reshape((T + 1) * Bp, I_PAD)

    # ---- packed initial state: [h_l0 | h_l1] and [c_l0 | c_l1] per batch row ----
    h_pack0 = jnp.concatenate([h0[0], h0[1]], axis=-1).astype(jnp.float32)   # (B, 2H)
    c_pack0 = jnp.concatenate([c0[0], c0[1]], axis=-1).astype(jnp.float32)
    state_in = jnp.stack([h_pack0, c_pack0], axis=0)                     # (2, B, 2H)
    state_in = jnp.pad(state_in, ((0, 0), (0, Bp - B), (0, 0)))          # (2, Bp, 2H)

    vmem = pl.BlockSpec(memory_space=pltpu.MemorySpace.VMEM)
    out2d, state_out = pl.pallas_call(
        stock_lstm_kernel,
        out_shape=(
            jax.ShapeDtypeStruct((T * Bp, O_PAD), jnp.float32),
            jax.ShapeDtypeStruct((2, Bp, 2 * H), jnp.float32),
        ),
        in_specs=[vmem] * 5,
        out_specs=(vmem, vmem),
        scratch_shapes=[
            pltpu.VMEM(((T + 1) * Bp, 8 * H), jnp.float32),  # hoisted fused gate projections
            pltpu.VMEM((T * Bp, 2 * H), jnp.float32),        # packed per-timestep hidden states
        ],
    )(x2d, win, wrec, wfc_pad, state_in)

    out = out2d[:, :OUTPUT_SIZE].reshape(T, Bp, OUTPUT_SIZE)[:, :B, :]   # drop pads
    out = jnp.transpose(out, (1, 0, 2))                                  # back to batch-first
    h_n = jnp.stack([state_out[0, :B, :H], state_out[0, :B, H:]], axis=0)
    c_n = jnp.stack([state_out[1, :B, :H], state_out[1, :B, H:]], axis=0)
    return out, (h_n, c_n)


# ---------------- deterministic parameter init (PyTorch-style U(-1/sqrt(H), 1/sqrt(H))) ----------------
def init_params(key):
    k = 1.0 / jnp.sqrt(jnp.float32(HIDDEN))
    keys = jax.random.split(key, 10)

    def u(kk, shape):
        return jax.random.uniform(kk, shape, jnp.float32, -k, k)

    wih0 = u(keys[0], (INPUT_SIZE, 4 * HIDDEN))        # W_ih_l0^T
    whh0 = u(keys[1], (HIDDEN, 4 * HIDDEN))            # W_hh_l0^T
    b0 = (u(keys[2], (1, 4 * HIDDEN)) + u(keys[3], (1, 4 * HIDDEN)))   # b_ih_l0 + b_hh_l0
    wih1 = u(keys[4], (HIDDEN, 4 * HIDDEN))            # W_ih_l1^T
    whh1 = u(keys[5], (HIDDEN, 4 * HIDDEN))            # W_hh_l1^T
    b1 = (u(keys[6], (1, 4 * HIDDEN)) + u(keys[7], (1, 4 * HIDDEN)))   # b_ih_l1 + b_hh_l1
    wfc = u(keys[8], (HIDDEN, OUTPUT_SIZE))            # fc.weight^T
    bfc = u(keys[9], (1, OUTPUT_SIZE))                 # fc.bias
    return (wih0, whh0, b0, wih1, whh1, b1, wfc, bfc)


# ---------------- pure-JAX reference (same math, PyTorch [i,f,g,o] order, no Pallas) ----------------
def reference_forward(data, params, hidden):
    wih0, whh0, b0, wih1, whh1, b1, wfc, bfc = params
    h0, c0 = hidden
    B, T, _ = data.shape

    def cell(x_t, h, c, wih, whh, b):
        g = x_t @ wih + h @ whh + b
        i = jax.nn.sigmoid(g[:, :HIDDEN])
        f = jax.nn.sigmoid(g[:, HIDDEN:2 * HIDDEN])
        gg = jnp.tanh(g[:, 2 * HIDDEN:3 * HIDDEN])
        o = jax.nn.sigmoid(g[:, 3 * HIDDEN:])
        c = f * c + i * gg
        h = o * jnp.tanh(c)
        return h, c

    def layer(xs, h, c, wih, whh, b):
        outs = []
        for t in range(T):
            h, c = cell(xs[:, t], h, c, wih, whh, b)
            outs.append(h)
        return jnp.stack(outs, axis=1), h, c

    y0, h_l0, c_l0 = layer(data, h0[0], c0[0], wih0, whh0, b0)
    y1, h_l1, c_l1 = layer(y0, h0[1], c0[1], wih1, whh1, b1)
    out = y1 @ wfc + bfc
    return out, (jnp.stack([h_l0, h_l1]), jnp.stack([c_l0, c_l1]))


if __name__ == "__main__":
    key = jax.random.PRNGKey(0)
    pkey, xkey = jax.random.split(key)

    params = init_params(pkey)
    data = jax.random.normal(xkey, (BATCH, SEQ, INPUT_SIZE), jnp.float32)

    # init_hidden(): zeros of shape (layer_count, batch_size, hidden_dim)
    hidden = (jnp.zeros((LAYERS, BATCH, HIDDEN), jnp.float32),
              jnp.zeros((LAYERS, BATCH, HIDDEN), jnp.float32))

    out, (h_n, c_n) = jax.jit(stock_lstm_forward)(data, params, hidden)
    out = jax.block_until_ready(out)
    h_n = jax.block_until_ready(h_n)
    c_n = jax.block_until_ready(c_n)

    ref_out, (ref_h, ref_c) = reference_forward(data, params, hidden)
    assert out.shape == (BATCH, SEQ, OUTPUT_SIZE)
    assert h_n.shape == (LAYERS, BATCH, HIDDEN) and c_n.shape == (LAYERS, BATCH, HIDDEN)
    # f32 MXU accumulation order differs slightly from the reference (fused K=64 dot, biases
    # folded through the MXU), so allow a tiny extra margin over strict 1e-5.
    assert jnp.allclose(out, ref_out, atol=2e-5), "output mismatch vs reference"
    assert jnp.allclose(h_n, ref_h, atol=2e-5), "h_n mismatch vs reference"
    assert jnp.allclose(c_n, ref_c, atol=2e-5), "c_n mismatch vs reference"

    print("KERNEL_OK")
</pallas_src>

<mosaic_0001>
module attributes {stable_mosaic.version = 11 : i64} {
  func.func @stock_lstm_kernel(%arg0: memref<72x8xf32, #tpu.memory_space<vmem>>, %arg1: memref<8x256xf32, #tpu.memory_space<vmem>>, %arg2: memref<64x256xf32, #tpu.memory_space<vmem>>, %arg3: memref<65x128xf32, #tpu.memory_space<vmem>>, %arg4: memref<2x8x64xf32, #tpu.memory_space<vmem>>, %arg5: memref<64x128xf32, #tpu.memory_space<vmem>>, %arg6: memref<2x8x64xf32, #tpu.memory_space<vmem>>, %arg7: memref<72x256xf32, #tpu.memory_space<vmem>>, %arg8: memref<64x64xf32, #tpu.memory_space<vmem>>) attributes {dimension_semantics = [], scalar_prefetch = 0 : i64, scratch_operands = 2 : i64, tpu.core_type = #tpu.core_type<tc>} {
    %c0 = arith.constant 0 : index
    %c0_0 = arith.constant 0 : index
    %0 = vector.load %arg0[%c0, %c0_0] : memref<72x8xf32, #tpu.memory_space<vmem>>, vector<72x8xf32>
    %c0_1 = arith.constant 0 : index
    %c0_2 = arith.constant 0 : index
    %1 = vector.load %arg1[%c0_1, %c0_2] : memref<8x256xf32, #tpu.memory_space<vmem>>, vector<8x256xf32>
    %cst = arith.constant dense<0.000000e+00> : vector<72x256xf32>
    %2 = tpu.matmul %0, %1, %cst {dimension_numbers = #tpu.dot_dimension_numbers<[1], [0], [0], [1], [0, 0, 1, 1], [], []>} : vector<72x8xf32>, vector<8x256xf32>, vector<72x256xf32> -> vector<72x256xf32>
    %c0_3 = arith.constant 0 : index
    %c0_4 = arith.constant 0 : index
    %3 = vector.load %arg7[%c0_3, %c0_4] : memref<72x256xf32, #tpu.memory_space<vmem>>, vector<72x256xf32>
    tpu.vector_store %arg7[%c0_3, %c0_4], %2 {strides = array<i32>} : memref<72x256xf32, #tpu.memory_space<vmem>>, vector<72x256xf32>,
    %c0_5 = arith.constant 0 : index
    %c0_6 = arith.constant 0 : index
    %4 = vector.load %arg2[%c0_5, %c0_6] : memref<64x256xf32, #tpu.memory_space<vmem>>, vector<64x256xf32>
    %5 = tpu.iota {dimensions = array<i32: 1>} : vector<8x64xi32>
    %c32_i32 = arith.constant 32 : i32
    %6 = vector.broadcast %c32_i32 : i32 to vector<8x64xi32>
    %7 = arith.cmpi slt, %5, %6 : vector<8x64xi32>
    %c0_7 = arith.constant 0 : index
    %c0_8 = arith.constant 0 : index
    %c0_9 = arith.constant 0 : index
    %8 = vector.load %arg4[%c0_7, %c0_8, %c0_9] : memref<2x8x64xf32, #tpu.memory_space<vmem>>, vector<1x8x64xf32>
    %9 = vector.shape_cast %8 : vector<1x8x64xf32> to vector<8x64xf32>
    %c1 = arith.constant 1 : index
    %c0_10 = arith.constant 0 : index
    %c0_11 = arith.constant 0 : index
    %10 = vector.load %arg4[%c1, %c0_10, %c0_11] : memref<2x8x64xf32, #tpu.memory_space<vmem>>, vector<1x8x64xf32>
    %11 = vector.shape_cast %10 : vector<1x8x64xf32> to vector<8x64xf32>
    %c0_i32 = arith.constant 0 : i32
    %12 = tpu.assume_multiple %c0_i32, 8 : i32
    %13 = arith.index_cast %12 : i32 to index
    %c0_12 = arith.constant 0 : index
    %14 = vector.load %arg7[%13, %c0_12] : memref<72x256xf32, #tpu.memory_space<vmem>>, vector<8x256xf32>
    %cst_13 = arith.constant dense<0.000000e+00> : vector<8x256xf32>
    %15 = tpu.matmul %9, %4, %cst_13 {dimension_numbers = #tpu.dot_dimension_numbers<[1], [0], [0], [1], [0, 0, 1, 1], [], []>} : vector<8x64xf32>, vector<64x256xf32>, vector<8x256xf32> -> vector<8x256xf32>
    %16 = arith.addf %14, %15 : vector<8x256xf32>
    %17 = vector.extract_strided_slice %16 {offsets = [0, 0], sizes = [8, 192], strides = [1, 1]} : vector<8x256xf32> to vector<8x192xf32>
    %18 = arith.negf %17 : vector<8x192xf32>
    %19 = math.exp %18 : vector<8x192xf32>
    %cst_14 = arith.constant 1.000000e+00 : f32
    %20 = vector.broadcast %cst_14 : f32 to vector<8x192xf32>
    %21 = arith.addf %20, %19 : vector<8x192xf32>
    %22 = arith.divf %20, %21 : vector<8x192xf32>
    %23 = vector.extract_strided_slice %16 {offsets = [0, 192], sizes = [8, 64], strides = [1, 1]} : vector<8x256xf32> to vector<8x64xf32>
    %24 = math.tanh %23 : vector<8x64xf32>
    %25 = vector.extract_strided_slice %22 {offsets = [0, 0], sizes = [8, 64], strides = [1, 1]} : vector<8x192xf32> to vector<8x64xf32>
    %26 = vector.extract_strided_slice %22 {offsets = [0, 64], sizes = [8, 64], strides = [1, 1]} : vector<8x192xf32> to vector<8x64xf32>
    %27 = vector.extract_strided_slice %22 {offsets = [0, 128], sizes = [8, 64], strides = [1, 1]} : vector<8x192xf32> to vector<8x64xf32>
    %28 = arith.mulf %26, %11 : vector<8x64xf32>
    %29 = arith.mulf %25, %24 : vector<8x64xf32>
    %30 = arith.addf %28, %29 : vector<8x64xf32>
    %31 = math.tanh %30 : vector<8x64xf32>
    %32 = arith.mulf %27, %31 : vector<8x64xf32>
    %33 = arith.select %7, %32, %9 : vector<8x64xi1>, vector<8x64xf32>
    %34 = arith.select %7, %30, %11 : vector<8x64xi1>, vector<8x64xf32>
    %c1_i32 = arith.constant 1 : i32
    %c8_i32 = arith.constant 8 : i32
    %35 = arith.muli %c1_i32, %c8_i32 : i32
    %36 = tpu.assume_multiple %35, 8 : i32
    %37 = arith.index_cast %36 : i32 to index
    %c0_15 = arith.constant 0 : index
    %38 = vector.load %arg7[%37, %c0_15] : memref<72x256xf32, #tpu.memory_space<vmem>>, vector<8x256xf32>
    %cst_16 = arith.constant dense<0.000000e+00> : vector<8x256xf32>
    %39 = tpu.matmul %33, %4, %cst_16 {dimension_numbers = #tpu.dot_dimension_numbers<[1], [0], [0], [1], [0, 0, 1, 1], [], []>} : vector<8x64xf32>, vector<64x256xf32>, vector<8x256xf32> -> vector<8x256xf32>
    %40 = arith.addf %38, %39 : vector<8x256xf32>
    %41 = vector.extract_strided_slice %40 {offsets = [0, 0], sizes = [8, 192], strides = [1, 1]} : vector<8x256xf32> to vector<8x192xf32>
    %42 = arith.negf %41 : vector<8x192xf32>
    %43 = math.exp %42 : vector<8x192xf32>
    %cst_17 = arith.constant 1.000000e+00 : f32
    %44 = vector.broadcast %cst_17 : f32 to vector<8x192xf32>
    %45 = arith.addf %44, %43 : vector<8x192xf32>
    %46 = arith.divf %44, %45 : vector<8x192xf32>
    %47 = vector.extract_strided_slice %40 {offsets = [0, 192], sizes = [8, 64], strides = [1, 1]} : vector<8x256xf32> to vector<8x64xf32>
    %48 = math.tanh %47 : vector<8x64xf32>
    %49 = vector.extract_strided_slice %46 {offsets = [0, 0], sizes = [8, 64], strides = [1, 1]} : vector<8x192xf32> to vector<8x64xf32>
    %50 = vector.extract_strided_slice %46 {offsets = [0, 64], sizes = [8, 64], strides = [1, 1]} : vector<8x192xf32> to vector<8x64xf32>
    %51 = vector.extract_strided_slice %46 {offsets = [0, 128], sizes = [8, 64], strides = [1, 1]} : vector<8x192xf32> to vector<8x64xf32>
    %52 = arith.mulf %50, %34 : vector<8x64xf32>
    %53 = arith.mulf %49, %48 : vector<8x64xf32>
    %54 = arith.addf %52, %53 : vector<8x64xf32>
    %55 = math.tanh %54 : vector<8x64xf32>
    %56 = arith.mulf %51, %55 : vector<8x64xf32>
    %c1_i32_18 = arith.constant 1 : i32
    %57 = arith.subi %c1_i32, %c1_i32_18 : i32
    %c8_i32_19 = arith.constant 8 : i32
    %58 = arith.muli %57, %c8_i32_19 : i32
    %59 = tpu.assume_multiple %58, 8 : i32
    %60 = arith.index_cast %59 : i32 to index
    %c0_20 = arith.constant 0 : index
    %61 = vector.load %arg8[%60, %c0_20] : memref<64x64xf32, #tpu.memory_space<vmem>>, vector<8x64xf32>
    tpu.vector_store %arg8[%60, %c0_20], %56 {strides = array<i32>} : memref<64x64xf32, #tpu.memory_space<vmem>>, vector<8x64xf32>,
    %c2_i32 = arith.constant 2 : i32
    %c8_i32_21 = arith.constant 8 : i32
    %62 = arith.muli %c2_i32, %c8_i32_21 : i32
    %63 = tpu.assume_multiple %62, 8 : i32
    %64 = arith.index_cast %63 : i32 to index
    %c0_22 = arith.constant 0 : index
    %65 = vector.load %arg7[%64, %c0_22] : memref<72x256xf32, #tpu.memory_space<vmem>>, vector<8x256xf32>
    %cst_23 = arith.constant dense<0.000000e+00> : vector<8x256xf32>
    %66 = tpu.matmul %56, %4, %cst_23 {dimension_numbers = #tpu.dot_dimension_numbers<[1], [0], [0], [1], [0, 0, 1, 1], [], []>} : vector<8x64xf32>, vector<64x256xf32>, vector<8x256xf32> -> vector<8x256xf32>
    %67 = arith.addf %65, %66 : vector<8x256xf32>
    %68 = vector.extract_strided_slice %67 {offsets = [0, 0], sizes = [8, 192], strides = [1, 1]} : vector<8x256xf32> to vector<8x192xf32>
    %69 = arith.negf %68 : vector<8x192xf32>
    %70 = math.exp %69 : vector<8x192xf32>
    %cst_24 = arith.constant 1.000000e+00 : f32
    %71 = vector.broadcast %cst_24 : f32 to vector<8x192xf32>
    %72 = arith.addf %71, %70 : vector<8x192xf32>
    %73 = arith.divf %71, %72 : vector<8x192xf32>
    %74 = vector.extract_strided_slice %67 {offsets = [0, 192], sizes = [8, 64], strides = [1, 1]} : vector<8x256xf32> to vector<8x64xf32>
    %75 = math.tanh %74 : vector<8x64xf32>
    %76 = vector.extract_strided_slice %73 {offsets = [0, 0], sizes = [8, 64], strides = [1, 1]} : vector<8x192xf32> to vector<8x64xf32>
    %77 = vector.extract_strided_slice %73 {offsets = [0, 64], sizes = [8, 64], strides = [1, 1]} : vector<8x192xf32> to vector<8x64xf32>
    %78 = vector.extract_strided_slice %73 {offsets = [0, 128], sizes = [8, 64], strides = [1, 1]} : vector<8x192xf32> to vector<8x64xf32>
    %79 = arith.mulf %77, %54 : vector<8x64xf32>
    %80 = arith.mulf %76, %75 : vector<8x64xf32>
    %81 = arith.addf %79, %80 : vector<8x64xf32>
    %82 = math.tanh %81 : vector<8x64xf32>
    %83 = arith.mulf %78, %82 : vector<8x64xf32>
    %c1_i32_25 = arith.constant 1 : i32
    %84 = arith.subi %c2_i32, %c1_i32_25 : i32
    %c8_i32_26 = arith.constant 8 : i32
    %85 = arith.muli %84, %c8_i32_26 : i32
    %86 = tpu.assume_multiple %85, 8 : i32
    %87 = arith.index_cast %86 : i32 to index
    %c0_27 = arith.constant 0 : index
    %88 = vector.load %arg8[%87, %c0_27] : memref<64x64xf32, #tpu.memory_space<vmem>>, vector<8x64xf32>
    tpu.vector_store %arg8[%87, %c0_27], %83 {strides = array<i32>} : memref<64x64xf32, #tpu.memory_space<vmem>>, vector<8x64xf32>,
    %c3_i32 = arith.constant 3 : i32
    %c8_i32_28 = arith.constant 8 : i32
    %89 = arith.muli %c3_i32, %c8_i32_28 : i32
    %90 = tpu.assume_multiple %89, 8 : i32
    %91 = arith.index_cast %90 : i32 to index
    %c0_29 = arith.constant 0 : index
    %92 = vector.load %arg7[%91, %c0_29] : memref<72x256xf32, #tpu.memory_space<vmem>>, vector<8x256xf32>
    %cst_30 = arith.constant dense<0.000000e+00> : vector<8x256xf32>
    %93 = tpu.matmul %83, %4, %cst_30 {dimension_numbers = #tpu.dot_dimension_numbers<[1], [0], [0], [1], [0, 0, 1, 1], [], []>} : vector<8x64xf32>, vector<64x256xf32>, vector<8x256xf32> -> vector<8x256xf32>
    %94 = arith.addf %92, %93 : vector<8x256xf32>
    %95 = vector.extract_strided_slice %94 {offsets = [0, 0], sizes = [8, 192], strides = [1, 1]} : vector<8x256xf32> to vector<8x192xf32>
    %96 = arith.negf %95 : vector<8x192xf32>
    %97 = math.exp %96 : vector<8x192xf32>
    %cst_31 = arith.constant 1.000000e+00 : f32
    %98 = vector.broadcast %cst_31 : f32 to vector<8x192xf32>
    %99 = arith.addf %98, %97 : vector<8x192xf32>
    %100 = arith.divf %98, %99 : vector<8x192xf32>
    %101 = vector.extract_strided_slice %94 {offsets = [0, 192], sizes = [8, 64], strides = [1, 1]} : vector<8x256xf32> to vector<8x64xf32>
    %102 = math.tanh %101 : vector<8x64xf32>
    %103 = vector.extract_strided_slice %100 {offsets = [0, 0], sizes = [8, 64], strides = [1, 1]} : vector<8x192xf32> to vector<8x64xf32>
    %104 = vector.extract_strided_slice %100 {offsets = [0, 64], sizes = [8, 64], strides = [1, 1]} : vector<8x192xf32> to vector<8x64xf32>
    %105 = vector.extract_strided_slice %100 {offsets = [0, 128], sizes = [8, 64], strides = [1, 1]} : vector<8x192xf32> to vector<8x64xf32>
    %106 = arith.mulf %104, %81 : vector<8x64xf32>
    %107 = arith.mulf %103, %102 : vector<8x64xf32>
    %108 = arith.addf %106, %107 : vector<8x64xf32>
    %109 = math.tanh %108 : vector<8x64xf32>
    %110 = arith.mulf %105, %109 : vector<8x64xf32>
    %c1_i32_32 = arith.constant 1 : i32
    %111 = arith.subi %c3_i32, %c1_i32_32 : i32
    %c8_i32_33 = arith.constant 8 : i32
    %112 = arith.muli %111, %c8_i32_33 : i32
    %113 = tpu.assume_multiple %112, 8 : i32
    %114 = arith.index_cast %113 : i32 to index
    %c0_34 = arith.constant 0 : index
    %115 = vector.load %arg8[%114, %c0_34] : memref<64x64xf32, #tpu.memory_space<vmem>>, vector<8x64xf32>
    tpu.vector_store %arg8[%114, %c0_34], %110 {strides = array<i32>} : memref<64x64xf32, #tpu.memory_space<vmem>>, vector<8x64xf32>,
    %c4_i32 = arith.constant 4 : i32
    %c8_i32_35 = arith.constant 8 : i32
    %116 = arith.muli %c4_i32, %c8_i32_35 : i32
    %117 = tpu.assume_multiple %116, 8 : i32
    %118 = arith.index_cast %117 : i32 to index
    %c0_36 = arith.constant 0 : index
    %119 = vector.load %arg7[%118, %c0_36] : memref<72x256xf32, #tpu.memory_space<vmem>>, vector<8x256xf32>
    %cst_37 = arith.constant dense<0.000000e+00> : vector<8x256xf32>
    %120 = tpu.matmul %110, %4, %cst_37 {dimension_numbers = #tpu.dot_dimension_numbers<[1], [0], [0], [1], [0, 0, 1, 1], [], []>} : vector<8x64xf32>, vector<64x256xf32>, vector<8x256xf32> -> vector<8x256xf32>
    %121 = arith.addf %119, %120 : vector<8x256xf32>
    %122 = vector.extract_strided_slice %121 {offsets = [0, 0], sizes = [8, 192], strides = [1, 1]} : vector<8x256xf32> to vector<8x192xf32>
    %123 = arith.negf %122 : vector<8x192xf32>
    %124 = math.exp %123 : vector<8x192xf32>
    %cst_38 = arith.constant 1.000000e+00 : f32
    %125 = vector.broadcast %cst_38 : f32 to vector<8x192xf32>
    %126 = arith.addf %125, %124 : vector<8x192xf32>
    %127 = arith.divf %125, %126 : vector<8x192xf32>
    %128 = vector.extract_strided_slice %121 {offsets = [0, 192], sizes = [8, 64], strides = [1, 1]} : vector<8x256xf32> to vector<8x64xf32>
    %129 = math.tanh %128 : vector<8x64xf32>
    %130 = vector.extract_strided_slice %127 {offsets = [0, 0], sizes = [8, 64], strides = [1, 1]} : vector<8x192xf32> to vector<8x64xf32>
    %131 = vector.extract_strided_slice %127 {offsets = [0, 64], sizes = [8, 64], strides = [1, 1]} : vector<8x192xf32> to vector<8x64xf32>
    %132 = vector.extract_strided_slice %127 {offsets = [0, 128], sizes = [8, 64], strides = [1, 1]} : vector<8x192xf32> to vector<8x64xf32>
    %133 = arith.mulf %131, %108 : vector<8x64xf32>
    %134 = arith.mulf %130, %129 : vector<8x64xf32>
    %135 = arith.addf %133, %134 : vector<8x64xf32>
    %136 = math.tanh %135 : vector<8x64xf32>
    %137 = arith.mulf %132, %136 : vector<8x64xf32>
    %c1_i32_39 = arith.constant 1 : i32
    %138 = arith.subi %c4_i32, %c1_i32_39 : i32
    %c8_i32_40 = arith.constant 8 : i32
    %139 = arith.muli %138, %c8_i32_40 : i32
    %140 = tpu.assume_multiple %139, 8 : i32
    %141 = arith.index_cast %140 : i32 to index
    %c0_41 = arith.constant 0 : index
    %142 = vector.load %arg8[%141, %c0_41] : memref<64x64xf32, #tpu.memory_space<vmem>>, vector<8x64xf32>
    tpu.vector_store %arg8[%141, %c0_41], %137 {strides = array<i32>} : memref<64x64xf32, #tpu.memory_space<vmem>>, vector<8x64xf32>,
    %c5_i32 = arith.constant 5 : i32
    %c8_i32_42 = arith.constant 8 : i32
    %143 = arith.muli %c5_i32, %c8_i32_42 : i32
    %144 = tpu.assume_multiple %143, 8 : i32
    %145 = arith.index_cast %144 : i32 to index
    %c0_43 = arith.constant 0 : index
    %146 = vector.load %arg7[%145, %c0_43] : memref<72x256xf32, #tpu.memory_space<vmem>>, vector<8x256xf32>
    %cst_44 = arith.constant dense<0.000000e+00> : vector<8x256xf32>
    %147 = tpu.matmul %137, %4, %cst_44 {dimension_numbers = #tpu.dot_dimension_numbers<[1], [0], [0], [1], [0, 0, 1, 1], [], []>} : vector<8x64xf32>, vector<64x256xf32>, vector<8x256xf32> -> vector<8x256xf32>
    %148 = arith.addf %146, %147 : vector<8x256xf32>
    %149 = vector.extract_strided_slice %148 {offsets = [0, 0], sizes = [8, 192], strides = [1, 1]} : vector<8x256xf32> to vector<8x192xf32>
    %150 = arith.negf %149 : vector<8x192xf32>
    %151 = math.exp %150 : vector<8x192xf32>
    %cst_45 = arith.constant 1.000000e+00 : f32
    %152 = vector.broadcast %cst_45 : f32 to vector<8x192xf32>
    %153 = arith.addf %152, %151 : vector<8x192xf32>
    %154 = arith.divf %152, %153 : vector<8x192xf32>
    %155 = vector.extract_strided_slice %148 {offsets = [0, 192], sizes = [8, 64], strides = [1, 1]} : vector<8x256xf32> to vector<8x64xf32>
    %156 = math.tanh %155 : vector<8x64xf32>
    %157 = vector.extract_strided_slice %154 {offsets = [0, 0], sizes = [8, 64], strides = [1, 1]} : vector<8x192xf32> to vector<8x64xf32>
    %158 = vector.extract_strided_slice %154 {offsets = [0, 64], sizes = [8, 64], strides = [1, 1]} : vector<8x192xf32> to vector<8x64xf32>
    %159 = vector.extract_strided_slice %154 {offsets = [0, 128], sizes = [8, 64], strides = [1, 1]} : vector<8x192xf32> to vector<8x64xf32>
    %160 = arith.mulf %158, %135 : vector<8x64xf32>
    %161 = arith.mulf %157, %156 : vector<8x64xf32>
    %162 = arith.addf %160, %161 : vector<8x64xf32>
    %163 = math.tanh %162 : vector<8x64xf32>
    %164 = arith.mulf %159, %163 : vector<8x64xf32>
    %c1_i32_46 = arith.constant 1 : i32
    %165 = arith.subi %c5_i32, %c1_i32_46 : i32
    %c8_i32_47 = arith.constant 8 : i32
    %166 = arith.muli %165, %c8_i32_47 : i32
    %167 = tpu.assume_multiple %166, 8 : i32
    %168 = arith.index_cast %167 : i32 to index
    %c0_48 = arith.constant 0 : index
    %169 = vector.load %arg8[%168, %c0_48] : memref<64x64xf32, #tpu.memory_space<vmem>>, vector<8x64xf32>
    tpu.vector_store %arg8[%168, %c0_48], %164 {strides = array<i32>} : memref<64x64xf32, #tpu.memory_space<vmem>>, vector<8x64xf32>,
    %c6_i32 = arith.constant 6 : i32
    %c8_i32_49 = arith.constant 8 : i32
    %170 = arith.muli %c6_i32, %c8_i32_49 : i32
    %171 = tpu.assume_multiple %170, 8 : i32
    %172 = arith.index_cast %171 : i32 to index
    %c0_50 = arith.constant 0 : index
    %173 = vector.load %arg7[%172, %c0_50] : memref<72x256xf32, #tpu.memory_space<vmem>>, vector<8x256xf32>
    %cst_51 = arith.constant dense<0.000000e+00> : vector<8x256xf32>
    %174 = tpu.matmul %164, %4, %cst_51 {dimension_numbers = #tpu.dot_dimension_numbers<[1], [0], [0], [1], [0, 0, 1, 1], [], []>} : vector<8x64xf32>, vector<64x256xf32>, vector<8x256xf32> -> vector<8x256xf32>
    %175 = arith.addf %173, %174 : vector<8x256xf32>
    %176 = vector.extract_strided_slice %175 {offsets = [0, 0], sizes = [8, 192], strides = [1, 1]} : vector<8x256xf32> to vector<8x192xf32>
    %177 = arith.negf %176 : vector<8x192xf32>
    %178 = math.exp %177 : vector<8x192xf32>
    %cst_52 = arith.constant 1.000000e+00 : f32
    %179 = vector.broadcast %cst_52 : f32 to vector<8x192xf32>
    %180 = arith.addf %179, %178 : vector<8x192xf32>
    %181 = arith.divf %179, %180 : vector<8x192xf32>
    %182 = vector.extract_strided_slice %175 {offsets = [0, 192], sizes = [8, 64], strides = [1, 1]} : vector<8x256xf32> to vector<8x64xf32>
    %183 = math.tanh %182 : vector<8x64xf32>
    %184 = vector.extract_strided_slice %181 {offsets = [0, 0], sizes = [8, 64], strides = [1, 1]} : vector<8x192xf32> to vector<8x64xf32>
    %185 = vector.extract_strided_slice %181 {offsets = [0, 64], sizes = [8, 64], strides = [1, 1]} : vector<8x192xf32> to vector<8x64xf32>
    %186 = vector.extract_strided_slice %181 {offsets = [0, 128], sizes = [8, 64], strides = [1, 1]} : vector<8x192xf32> to vector<8x64xf32>
    %187 = arith.mulf %185, %162 : vector<8x64xf32>
    %188 = arith.mulf %184, %183 : vector<8x64xf32>
    %189 = arith.addf %187, %188 : vector<8x64xf32>
    %190 = math.tanh %189 : vector<8x64xf32>
    %191 = arith.mulf %186, %190 : vector<8x64xf32>
    %c1_i32_53 = arith.constant 1 : i32
    %192 = arith.subi %c6_i32, %c1_i32_53 : i32
    %c8_i32_54 = arith.constant 8 : i32
    %193 = arith.muli %192, %c8_i32_54 : i32
    %194 = tpu.assume_multiple %193, 8 : i32
    %195 = arith.index_cast %194 : i32 to index
    %c0_55 = arith.constant 0 : index
    %196 = vector.load %arg8[%195, %c0_55] : memref<64x64xf32, #tpu.memory_space<vmem>>, vector<8x64xf32>
    tpu.vector_store %arg8[%195, %c0_55], %191 {strides = array<i32>} : memref<64x64xf32, #tpu.memory_space<vmem>>, vector<8x64xf32>,
    %c7_i32 = arith.constant 7 : i32
    %c8_i32_56 = arith.constant 8 : i32
    %197 = arith.muli %c7_i32, %c8_i32_56 : i32
    %198 = tpu.assume_multiple %197, 8 : i32
    %199 = arith.index_cast %198 : i32 to index
    %c0_57 = arith.constant 0 : index
    %200 = vector.load %arg7[%199, %c0_57] : memref<72x256xf32, #tpu.memory_space<vmem>>, vector<8x256xf32>
    %cst_58 = arith.constant dense<0.000000e+00> : vector<8x256xf32>
    %201 = tpu.matmul %191, %4, %cst_58 {dimension_numbers = #tpu.dot_dimension_numbers<[1], [0], [0], [1], [0, 0, 1, 1], [], []>} : vector<8x64xf32>, vector<64x256xf32>, vector<8x256xf32> -> vector<8x256xf32>
    %202 = arith.addf %200, %201 : vector<8x256xf32>
    %203 = vector.extract_strided_slice %202 {offsets = [0, 0], sizes = [8, 192], strides = [1, 1]} : vector<8x256xf32> to vector<8x192xf32>
    %204 = arith.negf %203 : vector<8x192xf32>
    %205 = math.exp %204 : vector<8x192xf32>
    %cst_59 = arith.constant 1.000000e+00 : f32
    %206 = vector.broadcast %cst_59 : f32 to vector<8x192xf32>
    %207 = arith.addf %206, %205 : vector<8x192xf32>
    %208 = arith.divf %206, %207 : vector<8x192xf32>
    %209 = vector.extract_strided_slice %202 {offsets = [0, 192], sizes = [8, 64], strides = [1, 1]} : vector<8x256xf32> to vector<8x64xf32>
    %210 = math.tanh %209 : vector<8x64xf32>
    %211 = vector.extract_strided_slice %208 {offsets = [0, 0], sizes = [8, 64], strides = [1, 1]} : vector<8x192xf32> to vector<8x64xf32>
    %212 = vector.extract_strided_slice %208 {offsets = [0, 64], sizes = [8, 64], strides = [1, 1]} : vector<8x192xf32> to vector<8x64xf32>
    %213 = vector.extract_strided_slice %208 {offsets = [0, 128], sizes = [8, 64], strides = [1, 1]} : vector<8x192xf32> to vector<8x64xf32>
    %214 = arith.mulf %212, %189 : vector<8x64xf32>
    %215 = arith.mulf %211, %210 : vector<8x64xf32>
    %216 = arith.addf %214, %215 : vector<8x64xf32>
    %217 = math.tanh %216 : vector<8x64xf32>
    %218 = arith.mulf %213, %217 : vector<8x64xf32>
    %c1_i32_60 = arith.constant 1 : i32
    %219 = arith.subi %c7_i32, %c1_i32_60 : i32
    %c8_i32_61 = arith.constant 8 : i32
    %220 = arith.muli %219, %c8_i32_61 : i32
    %221 = tpu.assume_multiple %220, 8 : i32
    %222 = arith.index_cast %221 : i32 to index
    %c0_62 = arith.constant 0 : index
    %223 = vector.load %arg8[%222, %c0_62] : memref<64x64xf32, #tpu.memory_space<vmem>>, vector<8x64xf32>
    tpu.vector_store %arg8[%222, %c0_62], %218 {strides = array<i32>} : memref<64x64xf32, #tpu.memory_space<vmem>>, vector<8x64xf32>,
    %c7_i32_63 = arith.constant 7 : i32
    %c64_i32 = arith.constant 64 : i32
    %224 = tpu.assume_multiple %c64_i32, 8 : i32
    %225 = arith.index_cast %224 : i32 to index
    %c0_64 = arith.constant 0 : index
    %226 = vector.load %arg7[%225, %c0_64] : memref<72x256xf32, #tpu.memory_space<vmem>>, vector<8x256xf32>
    %cst_65 = arith.constant dense<0.000000e+00> : vector<8x256xf32>
    %227 = tpu.matmul %218, %4, %cst_65 {dimension_numbers = #tpu.dot_dimension_numbers<[1], [0], [0], [1], [0, 0, 1, 1], [], []>} : vector<8x64xf32>, vector<64x256xf32>, vector<8x256xf32> -> vector<8x256xf32>
    %228 = arith.addf %226, %227 : vector<8x256xf32>
    %229 = vector.extract_strided_slice %228 {offsets = [0, 0], sizes = [8, 192], strides = [1, 1]} : vector<8x256xf32> to vector<8x192xf32>
    %230 = arith.negf %229 : vector<8x192xf32>
    %231 = math.exp %230 : vector<8x192xf32>
    %cst_66 = arith.constant 1.000000e+00 : f32
    %232 = vector.broadcast %cst_66 : f32 to vector<8x192xf32>
    %233 = arith.addf %232, %231 : vector<8x192xf32>
    %234 = arith.divf %232, %233 : vector<8x192xf32>
    %235 = vector.extract_strided_slice %228 {offsets = [0, 192], sizes = [8, 64], strides = [1, 1]} : vector<8x256xf32> to vector<8x64xf32>
    %236 = math.tanh %235 : vector<8x64xf32>
    %237 = vector.extract_strided_slice %234 {offsets = [0, 0], sizes = [8, 64], strides = [1, 1]} : vector<8x192xf32> to vector<8x64xf32>
    %238 = vector.extract_strided_slice %234 {offsets = [0, 64], sizes = [8, 64], strides = [1, 1]} : vector<8x192xf32> to vector<8x64xf32>
    %239 = vector.extract_strided_slice %234 {offsets = [0, 128], sizes = [8, 64], strides = [1, 1]} : vector<8x192xf32> to vector<8x64xf32>
    %240 = arith.mulf %238, %216 : vector<8x64xf32>
    %241 = arith.mulf %237, %236 : vector<8x64xf32>
    %242 = arith.addf %240, %241 : vector<8x64xf32>
    %243 = math.tanh %242 : vector<8x64xf32>
    %244 = arith.mulf %239, %243 : vector<8x64xf32>
    %245 = arith.select %7, %218, %244 : vector<8x64xi1>, vector<8x64xf32>
    %246 = arith.select %7, %216, %242 : vector<8x64xi1>, vector<8x64xf32>
    %c56_i32 = arith.constant 56 : i32
    %247 = tpu.assume_multiple %c56_i32, 8 : i32
    %248 = arith.index_cast %247 : i32 to index
    %c0_67 = arith.constant 0 : index
    %249 = vector.load %arg8[%248, %c0_67] : memref<64x64xf32, #tpu.memory_space<vmem>>, vector<8x64xf32>
    tpu.vector_store %arg8[%248, %c0_67], %245 {strides = array<i32>} : memref<64x64xf32, #tpu.memory_space<vmem>>, vector<8x64xf32>,
    %c0_68 = arith.constant 0 : index
    %c0_69 = arith.constant 0 : index
    %c0_70 = arith.constant 0 : index
    %250 = vector.load %arg6[%c0_68, %c0_69, %c0_70] : memref<2x8x64xf32, #tpu.memory_space<vmem>>, vector<1x8x64xf32>
    %251 = vector.shape_cast %250 : vector<1x8x64xf32> to vector<8x64xf32>
    %252 = vector.shape_cast %245 : vector<8x64xf32> to vector<1x8x64xf32>
    tpu.vector_store %arg6[%c0_68, %c0_69, %c0_70], %252 {strides = array<i32>} : memref<2x8x64xf32, #tpu.memory_space<vmem>>, vector<1x8x64xf32>,
    %c1_71 = arith.constant 1 : index
    %c0_72 = arith.constant 0 : index
    %c0_73 = arith.constant 0 : index
    %253 = vector.load %arg6[%c1_71, %c0_72, %c0_73] : memref<2x8x64xf32, #tpu.memory_space<vmem>>, vector<1x8x64xf32>
    %254 = vector.shape_cast %253 : vector<1x8x64xf32> to vector<8x64xf32>
    %255 = vector.shape_cast %246 : vector<8x64xf32> to vector<1x8x64xf32>
    tpu.vector_store %arg6[%c1_71, %c0_72, %c0_73], %255 {strides = array<i32>} : memref<2x8x64xf32, #tpu.memory_space<vmem>>, vector<1x8x64xf32>,
    %c0_74 = arith.constant 0 : index
    %c0_75 = arith.constant 0 : index
    %256 = vector.load %arg8[%c0_74, %c0_75] : memref<64x64xf32, #tpu.memory_space<vmem>>, vector<64x64xf32>
    %c0_76 = arith.constant 0 : index
    %c0_77 = arith.constant 0 : index
    %257 = vector.load %arg3[%c0_76, %c0_77] : memref<65x128xf32, #tpu.memory_space<vmem>>, vector<64x128xf32>
    %cst_78 = arith.constant dense<0.000000e+00> : vector<64x128xf32>
    %258 = tpu.matmul %256, %257, %cst_78 {dimension_numbers = #tpu.dot_dimension_numbers<[1], [0], [0], [1], [0, 0, 1, 1], [], []>} : vector<64x64xf32>, vector<64x128xf32>, vector<64x128xf32> -> vector<64x128xf32>
    %c64 = arith.constant 64 : index
    %c0_79 = arith.constant 0 : index
    %259 = vector.load %arg3[%c64, %c0_79] : memref<65x128xf32, #tpu.memory_space<vmem>>, vector<1x128xf32>
    %260 = vector.broadcast %259 : vector<1x128xf32> to vector<64x128xf32>
    %261 = arith.addf %258, %260 : vector<64x128xf32>
    %c0_80 = arith.constant 0 : index
    %c0_81 = arith.constant 0 : index
    %262 = vector.load %arg5[%c0_80, %c0_81] : memref<64x128xf32, #tpu.memory_space<vmem>>, vector<64x128xf32>
    tpu.vector_store %arg5[%c0_80, %c0_81], %261 {strides = array<i32>} : memref<64x128xf32, #tpu.memory_space<vmem>>, vector<64x128xf32>,
    return
  }
}

</mosaic_0001>

<bundles_post_ra>
// kernel: stock_lstm_forward.1
= control target key start
LH: loop header
LB: loop body
LE: loop exit
PB: predicated region body
PF: predicated region fallthrough
CT: control target
= control target key end

     0   :  { %v1815_v2 = vmov 0.0   ;;  %vm33_vm0 = vcmask 64512   ;;  %vm225_vm1 = vcmask 523264   ;;  %s2231_s1 = inlined_call_operand.vmem [shape: f32[8,256], index: 1, kind: input, shape index: {}]   ;;  %s2232_s0 = inlined_call_operand.vmem [shape: f32[72,8], index: 0, kind: input, shape index: {}]   ;;  %s2233_s2 = inlined_call_operand.vmem [shape: f32[64,256], index: 2, kind: input, shape index: {}]   ;;  %s2234_s4 = inlined_call_operand.vmem [shape: f32[2,8,64], index: 4, kind: input, shape index: {}]   ;;  %s2235_s3 = inlined_call_operand.vmem [shape: f32[65,128], index: 3, kind: input, shape index: {}]   ;;  %s2236_s5 = inlined_call_operand.vmem [shape: f32[64,128], index: 5, kind: output, shape index: {0}]   ;;  %s2237_s6 = inlined_call_operand.vmem [shape: f32[2,8,64], index: 6, kind: output, shape index: {1}]  }
   0x1   :  { %v32_v0 = vld [vmem:[%s2231_s1 + $0x8] sm:$0xff]  ;;  %v31_v1 = vld [vmem:[%s2231_s1] sm:$0xff]  ;;  %125 = vmatprep.mubr.f32.mxu1 %v1815_v2  ;;  %643 = vmatprep.mubr.f32.mxu0 %v1815_v2  ;;  %v201_v5 = vld [vmem:[%s2233_s2 + $0x18] sm:$0xff] }
   0x2   :  { %v22_v3 = vld [vmem:[%s2232_s0] sm:$0xff]  ;;  %61 = vmatprep.subr.mxu1 %v32_v0  ;;  %v199_v4 = vld [vmem:[%s2233_s2 + $0x8] sm:$0xff]  ;;  %v200_v8 = vld [vmem:[%s2233_s2 + $0x10] sm:$0xff] }
   0x3   :  { %v198_v6 = vld [vmem:[%s2233_s2] sm:$0xff]  ;;  %62 = vmatpush1.msra.mxu1 %v31_v1  ;;  %v1872_v7 = vpack.c.bf16 %v201_v5, %v199_v4  ;;  %v203_v10 = vld [vmem:[%s2233_s2 + $0x28] sm:$0xff]  ;;  %v205_v11 = vld [vmem:[%s2233_s2 + $0x38] sm:$0xff]  ;;  %v214_v1 = vlaneseq }
   0x4   :  { %1436 = vmatmul.mubr.msk.f32.vlgmr.msra.gmra.mrb[0].mxu1 %vm33_vm0, %v22_v3  ;;  %v1878_v9 = vpack.c.bf16 %v200_v8, %v198_v6  ;;  %v202_v12 = vld [vmem:[%s2233_s2 + $0x20] sm:$0xff]  ;;  %v23_v13 = vld [vmem:[%s2232_s0 + $0x8] sm:$0xff]  ;;  %v1894_v14 = vpack.c.bf16 %v205_v11, %v203_v10  ;;  %v204_v15 = vld [vmem:[%s2233_s2 + $0x30] sm:$0xff] }
   0x5   :  { %1528 = vmatprep.subr.bf16.mxu1 %v1872_v7  ;;  %131 = vmatprep.mubr.f32.mxu1 %v1815_v2  ;;  %v1900_v16 = vpack.c.bf16 %v204_v15, %v202_v12  ;;  %v207_v17 = vld [vmem:[%s2233_s2 + $0x48] sm:$0xff]  ;;  %v209_v18 = vld [vmem:[%s2233_s2 + $0x58] sm:$0xff]  ;;  %v206_v20 = vld [vmem:[%s2233_s2 + $0x40] sm:$0xff]  ;;  %v2035_v4 = vand.u32 127, %v214_v1 }
   0x6   :  { %1530 = vmatpush1.bf16.msra.mxu1 %v1878_v9  ;;  %1576 = vmatprep.subr.bf16.mxu0 %v1872_v7  ;;  %v1910_v19 = vpack.c.bf16 %v209_v18, %v207_v17  ;;  %v208_v21 = vld [vmem:[%s2233_s2 + $0x50] sm:$0xff]  ;;  %v211_v22 = vld [vmem:[%s2233_s2 + $0x68] sm:$0xff]  ;;  %v213_v23 = vld [vmem:[%s2233_s2 + $0x78] sm:$0xff] }
   0x7   :  { %1532 = vmatprep.subr.bf16.mxu1 %v1894_v14  ;;  %1578 = vmatpush1.bf16.msra.mxu0 %v1878_v9  ;;  %v24_v24 = vld [vmem:[%s2232_s0 + $0x10] sm:$0xff]  ;;  %v1932_v25 = vpack.c.bf16 %v208_v21, %v206_v20  ;;  %v1935_v26 = vpack.c.bf16 %v213_v23, %v211_v22  ;;  %v210_v27 = vld [vmem:[%s2233_s2 + $0x60] sm:$0xff]  ;;  %v25_v29 = vld [vmem:[%s2232_s0 + $0x18] sm:$0xff]  ;;  %vm216_vm2 = vcmp.lt.s32.totalorder %v2035_v4, 32 }
   0x8   :  { %1437 = vmatmul.mubr.msk.f32.gmra.mrb[2].mxu1 %vm33_vm0, %v23_v13  ;;  %1580 = vmatprep.subr.bf16.mxu0 %v1894_v14  ;;  %v212_v28 = vld [vmem:[%s2233_s2 + $0x70] sm:$0xff]  ;;  %v26_v31 = vld [vmem:[%s2232_s0 + $0x20] sm:$0xff]  ;;  %v27_v32 = vld [vmem:[%s2232_s0 + $0x28] sm:$0xff] }
   0x9   :  { %137 = vmatprep.mubr.f32.mxu1 %v1815_v2  ;;  %v1951_v30 = vpack.c.bf16 %v212_v28, %v210_v27  ;;  %v28_v33 = vld [vmem:[%s2232_s0 + $0x30] sm:$0xff]  ;;  %v29_v34 = vld [vmem:[%s2232_s0 + $0x38] sm:$0xff]  ;;  %v30_v35 = vld [vmem:[%s2232_s0 + $0x40] sm:$0xff]  ;;  %s1816_s0 = smov 64  }
   0xa   :  { %1534 = vmatpush1.bf16.msra.mxu1 %v1900_v16  ;;  %v1990_v36 = vld [vmem:[%s2234_s4] sm:$0xff]  ;;  %v1445_v52 = vld [vmem:[%s2234_s4 + $0x8] sm:$0xff] }
   0xb   :  { %1536 = vmatprep.subr.bf16.mxu1 %v1910_v19  ;;  %1582 = vmatpush1.bf16.msra.mxu0 %v1900_v16 }
   0xc   :  { %1438 = vmatmul.mubr.msk.f32.gmra.mrb[4].mxu1 %vm33_vm0, %v24_v24  ;;  %1584 = vmatprep.subr.bf16.mxu0 %v1910_v19 }
   0xd   :  { %143 = vmatprep.mubr.f32.mxu1 %v1815_v2 }
   0xe   :  { %1538 = vmatpush1.bf16.msra.mxu1 %v1932_v25 }
   0xf   :  { %1540 = vmatprep.subr.bf16.mxu1 %v1935_v26  ;;  %1586 = vmatpush1.bf16.msra.mxu0 %v1932_v25 }
  0x10   :  { %1439 = vmatmul.mubr.msk.f32.gmra.mrb[6].mxu1 %vm33_vm0, %v25_v29  ;;  %1588 = vmatprep.subr.bf16.mxu0 %v1935_v26 }
  0x11   :  { %149 = vmatprep.mubr.f32.mxu1 %v1815_v2 }
  0x12   :  { %1542 = vmatpush1.bf16.msra.mxu1 %v1951_v30 }
  0x13   :  { %1544 = vmatprep.subr.bf16.mxu1 %v1872_v7  ;;  %1590 = vmatpush1.bf16.msra.mxu0 %v1951_v30 }
  0x14   :  { %1440 = vmatmul.mubr.msk.f32.gmra.mrb[8].mxu1 %vm33_vm0, %v26_v31  ;;  %1592 = vmatprep.subr.bf16.mxu0 %v1872_v7 }
  0x15   :  { %155 = vmatprep.mubr.f32.mxu1 %v1815_v2 }
  0x18   :  { %1441 = vmatmul.mubr.msk.f32.gmra.mrb[10].mxu1 %vm33_vm0, %v27_v32 }
  0x19   :  { %161 = vmatprep.mubr.f32.mxu1 %v1815_v2 }
  0x1c   :  { %1442 = vmatmul.mubr.msk.f32.gmra.mrb[12].mxu1 %vm33_vm0, %v28_v33 }
  0x1d   :  { %167 = vmatprep.mubr.f32.mxu1 %v1815_v2 }
  0x20   :  { %1443 = vmatmul.mubr.msk.f32.gmra.mrb[14].mxu1 %vm33_vm0, %v29_v34 }
  0x21   :  { %173 = vmatprep.mubr.f32.mxu1 %v1815_v2 }
  0x24   :  { %1444 = vmatmul.mubr.msk.f32.gmra.mrb[16].mxu1 %vm33_vm0, %v30_v35 }
  0x25   :  { %293 = vmatprep.mubr.f32.mxu1 %v1815_v2 }
  0x28   :  { %1446 = vmatmul.mubr.msk.f32.vlgmr.msra.gmra.mrb[0].mxu1 %vm225_vm1, %v1990_v36 }
  0x29   :  { %1546 = vmatpush1.bf16.msra.mxu1 %v1878_v9  ;;  %414 = vmatprep.mubr.f32.mxu1 %v1815_v2 }
  0x2a   :  { %1548 = vmatprep.subr.bf16.mxu1 %v1894_v14 }
  0x2d   :  { %1550 = vmatpush1.bf16.msra.mxu1 %v1900_v16 }
  0x2e   :  { %1552 = vmatprep.subr.bf16.mxu1 %v1910_v19 }
  0x31   :  { %1554 = vmatpush1.bf16.msra.mxu1 %v1932_v25 }
  0x32   :  { %1556 = vmatprep.subr.bf16.mxu1 %v1935_v26 }
  0x35   :  { %1558 = vmatpush1.bf16.msra.mxu1 %v1951_v30 }
  0x36   :  { %1560 = vmatprep.subr.bf16.mxu1 %v1872_v7 }
  0xe3   :  { %v2003_v37 = vpop.f32.mrb[6].mxu1 }
  0xe4   :  { %v2005_v38 = vpop.f32.mrb[7].mxu1 }
  0xe7   :  { %v2007_v39 = vpop.f32.mrb[8].mxu1 }
  0xe8   :  { %v2009_v40 = vpop.f32.mrb[9].mxu1 }
  0xeb   :  { %v2011_v41 = vpop.f32.mrb[10].mxu1 }
  0xec   :  { %v2013_v42 = vpop.f32.mrb[11].mxu1 }
  0xef   :  { %v2015_v43 = vpop.f32.mrb[12].mxu1 }
  0xf0   :  { %v2017_v44 = vpop.f32.mrb[13].mxu1 }
  0xf3   :  { %v2019_v45 = vpop.f32.mrb[14].mxu1 }
  0xf4   :  { %v2021_v46 = vpop.f32.mrb[15].mxu1 }
  0xf7   :  { %v2023_v47 = vpop.f32.mrb[16].mxu1 }
  0xf8   :  { %v2025_v48 = vpop.f32.mrb[17].mxu1 }
  0xfb   :  { %v295_v49 = vpop.f32.mrb[0].mxu1 }
  0xfc   :  { %v297_v50 = vpop.f32.mrb[1].mxu1  ;;  %v1447_v53 = vmul.f32 -1.442695, %v295_v49 }
  0xfd   :  { %1707 = vtanh.f32 %v297_v50  ;;  %v1448_v0 = vmul.f32 -1.442695, %v297_v50 }
  0xfe   :  { %1709 = vpow2.f32 %v1447_v53 }
 0x107   :  { %v1708_v51 = vpop.eup %1707 }
 0x108   :  { %321 = vrot.lane.b32.xlu0 %v1708_v51, %s1816_s0  ;;  %v1710_v54 = vpop.eup %1709 }
 0x109   :  { %v308_v55 = vadd.f32 1.0, %v1710_v54 }
 0x10b   :  { %1711 = vrcp.f32 %v308_v55 }
 0x10c   :  { %316 = vrot.lane.b32.xlu0 %v1445_v52, %s1816_s0 }
 0x115   :  { %v1712_v56 = vpop.eup %1711 }
 0x17a   :  { %v322_v57 = vpop.permute.xlu0 %321 }
 0x17b   :  { %v324_v58 = vmul.f32 %v1712_v56, %v322_v57 }
 0x17d   :  { %326 = vrot.lane.b32.xlu1 %v324_v58, %s1816_s0 }
 0x17e   :  { %v317_v59 = vpop.permute.xlu0 %316 }
 0x17f   :  { %v319_v60 = vmul.f32 %v1712_v56, %v317_v59 }
 0x1ef   :  { %v327_v61 = vpop.permute.xlu1 %326 }
 0x1f0   :  { %v329_v62 = vadd.f32 %v327_v61, %v319_v60 }
 0x1f2   :  { %1713 = vtanh.f32 %v329_v62  ;;  %338 = vrot.lane.b32.xlu0 %v329_v62, %s1816_s0  ;;  %v1270_v62 = vld [vmem:[%s2235_s3] sm:$0xff] }
 0x1f3   :  { %1715 = vpow2.f32 %v1448_v0  ;;  %v1272_v0 = vld [vmem:[%s2235_s3 + $0x10] sm:$0xff] }
 0x1fc   :  { %v1714_v63 = vpop.eup %1713 }
 0x1fd   :  { %332 = vrot.lane.b32.xlu1 %v1714_v63, %s1816_s0  ;;  %v1716_v3 = vpop.eup %1715  ;;  %v1271_v63 = vld [vmem:[%s2235_s3 + $0x8] sm:$0xff] }
 0x1fe   :  { %v309_v5 = vadd.f32 1.0, %v1716_v3  ;;  %v1671_v1 = vpack.c.bf16 %v1271_v63, %v1270_v62  ;;  %v1273_v3 = vld [vmem:[%s2235_s3 + $0x18] sm:$0xff] }
 0x200   :  { %1717 = vrcp.f32 %v309_v5  ;;  %v1675_v5 = vpack.c.bf16 %v1273_v3, %v1272_v0 }
 0x20a   :  { %v1718_v10 = vpop.eup %1717 }
 0x264   :  { %v339_v6 = vpop.permute.xlu0 %338 }
 0x265   :  { %v341_v8 = vsel %vm216_vm2, %v339_v6, %v1445_v52 }
 0x266   :  { %437 = vrot.lane.b32.xlu0 %v341_v8, %s1816_s0 }
 0x26f   :  { %v333_v11 = vpop.permute.xlu1 %332 }
 0x270   :  { %v335_v12 = vmul.f32 %v1718_v10, %v333_v11  ;;  %v1274_v10 = vld [vmem:[%s2235_s3 + $0x20] sm:$0xff]  ;;  %v1275_v11 = vld [vmem:[%s2235_s3 + $0x28] sm:$0xff] }
 0x272   :  { %v336_v13 = vsel %vm216_vm2, %v335_v12, %v1990_v36 }
 0x273   :  { %1449 = vmatmul.mubr.msk.f32.vlgmr.msra.gmra.mrb[2].mxu1 %vm225_vm1, %v336_v13  ;;  %v1679_v13 = vpack.c.bf16 %v1275_v11, %v1274_v10 }
 0x274   :  { %1562 = vmatpush1.bf16.msra.mxu1 %v1878_v9  ;;  %530 = vmatprep.mubr.f32.mxu1 %v1815_v2 }
 0x275   :  { %1564 = vmatprep.subr.bf16.mxu1 %v1894_v14 }
 0x278   :  { %1566 = vmatpush1.bf16.msra.mxu1 %v1900_v16 }
 0x279   :  { %1568 = vmatprep.subr.bf16.mxu1 %v1910_v19 }
 0x27c   :  { %1570 = vmatpush1.bf16.msra.mxu1 %v1932_v25 }
 0x27d   :  { %1572 = vmatprep.subr.bf16.mxu1 %v1935_v26 }
 0x280   :  { %1574 = vmatpush1.bf16.msra.mxu1 %v1951_v30 }
 0x281   :  { %1672 = vmatprep.subr.bf16.mxu1 %v1671_v1 }
 0x2d8   :  { %v438_v28 = vpop.permute.xlu0 %437 }
 0x346   :  { %v416_v15 = vpop.f32.mrb[2].mxu1 }
 0x347   :  { %v418_v17 = vpop.f32.mrb[3].mxu1  ;;  %v1450_v20 = vmul.f32 -1.442695, %v416_v15  ;;  %v1276_v15 = vld [vmem:[%s2235_s3 + $0x30] sm:$0xff] }
 0x348   :  { %1719 = vtanh.f32 %v418_v17  ;;  %v1451_v34 = vmul.f32 -1.442695, %v418_v17  ;;  %v1277_v17 = vld [vmem:[%s2235_s3 + $0x38] sm:$0xff] }
 0x349   :  { %1721 = vpow2.f32 %v1450_v20 }
 0x352   :  { %v1720_v18 = vpop.eup %1719 }
 0x353   :  { %442 = vrot.lane.b32.xlu1 %v1720_v18, %s1816_s0  ;;  %v1722_v21 = vpop.eup %1721  ;;  %v1683_v18 = vpack.c.bf16 %v1277_v17, %v1276_v15 }
 0x354   :  { %v429_v22 = vadd.f32 1.0, %v1722_v21 }
 0x356   :  { %1723 = vrcp.f32 %v429_v22 }
 0x360   :  { %v1724_v23 = vpop.eup %1723 }
 0x361   :  { %v440_v29 = vmul.f32 %v1724_v23, %v438_v28 }
 0x3c5   :  { %v443_v24 = vpop.permute.xlu1 %442 }
 0x3c6   :  { %v445_v27 = vmul.f32 %v1724_v23, %v443_v24 }
 0x3c8   :  { %447 = vrot.lane.b32.xlu1 %v445_v27, %s1816_s0 }
 0x43a   :  { %v448_v31 = vpop.permute.xlu1 %447 }
 0x43b   :  { %v450_v32 = vadd.f32 %v448_v31, %v440_v29 }
 0x43d   :  { %1725 = vtanh.f32 %v450_v32 }
 0x43e   :  { %1727 = vpow2.f32 %v1451_v34 }
 0x447   :  { %v1726_v33 = vpop.eup %1725 }
 0x448   :  { %453 = vrot.lane.b32.xlu0 %v1726_v33, %s1816_s0  ;;  %v1728_v35 = vpop.eup %1727 }
 0x449   :  { %v430_v36 = vadd.f32 1.0, %v1728_v35  ;;  %v2103_v35 = vld [vmem:[%s2235_s3 + $0x40] ss:$0 sm:$0xff] }
 0x44b   :  { %1729 = vrcp.f32 %v430_v36 }
 0x455   :  { %v1730_v49 = vpop.eup %1729 }
 0x4ba   :  { %v454_v50 = vpop.permute.xlu0 %453 }
 0x4bb   :  { %v456_v51 = vmul.f32 %v1730_v49, %v454_v50 }
 0x4bd   :  { %457 = vst.msk [vmem:[#allocation3] sm:$0xff] %vm225_vm1, %v456_v51  ;;  %1452 = vmatmul.mubr.msk.f32.vlgmr.msra.gmra.mrb[4].mxu1 %vm225_vm1, %v456_v51 }
 0x4be   :  { %1674 = vmatpush3.bf16.msra.mxu1 %v1671_v1 }
 0x4bf   :  { %1676 = vmatprep.subr.bf16.mxu1 %v1675_v5 }
 0x4c2   :  { %1678 = vmatpush3.bf16.msra.mxu1 %v1675_v5 }
 0x4c3   :  { %1680 = vmatprep.subr.bf16.mxu1 %v1679_v13 }
 0x4c4   :  { %v1262_v52 = vld [vmem:[#allocation3] sm:$0xff] }
 0x4c5   :  { %1515 = vmatprep.mubr.msk.f32.mxu1 %vm225_vm1, %v1262_v52 }
 0x4c6   :  { %1682 = vmatpush3.bf16.msra.mxu1 %v1679_v13 }
 0x4c7   :  { %1684 = vmatprep.subr.bf16.mxu1 %v1683_v18 }
 0x4ca   :  { %1686 = vmatpush3.bf16.msra.mxu1 %v1683_v18 }
 0x590   :  { %v532_v53 = vpop.f32.mrb[4].mxu1 }
 0x591   :  { %v534_v54 = vpop.f32.mrb[5].mxu1  ;;  %v1453_v56 = vmul.f32 -1.442695, %v532_v53 }
 0x592   :  { %1731 = vtanh.f32 %v534_v54  ;;  %v1454_v21 = vmul.f32 -1.442695, %v534_v54 }
 0x593   :  { %1733 = vpow2.f32 %v1453_v56 }
 0x59c   :  { %v1732_v55 = vpop.eup %1731 }
 0x59d   :  { %554 = vrot.lane.b32.xlu1 %v1732_v55, %s1816_s0  ;;  %v1734_v57 = vpop.eup %1733 }
 0x59e   :  { %v545_v58 = vadd.f32 1.0, %v1734_v57 }
 0x5a0   :  { %1735 = vrcp.f32 %v545_v58 }
 0x5aa   :  { %v1736_v59 = vpop.eup %1735 }
 0x5ab   :  { %v552_v6 = vmul.f32 %v1736_v59, %v450_v32 }
 0x60f   :  { %v555_v60 = vpop.permute.xlu1 %554 }
 0x610   :  { %v557_v61 = vmul.f32 %v1736_v59, %v555_v60 }
 0x612   :  { %559 = vrot.lane.b32.xlu0 %v557_v61, %s1816_s0 }
 0x684   :  { %v560_v8 = vpop.permute.xlu0 %559 }
 0x685   :  { %v562_v12 = vadd.f32 %v560_v8, %v552_v6 }
 0x687   :  { %1737 = vtanh.f32 %v562_v12 }
 0x688   :  { %1739 = vpow2.f32 %v1454_v21 }
 0x691   :  { %v1738_v20 = vpop.eup %1737 }
 0x692   :  { %565 = vrot.lane.b32.xlu1 %v1738_v20, %s1816_s0  ;;  %v1740_v22 = vpop.eup %1739 }
 0x693   :  { %v546_v23 = vadd.f32 1.0, %v1740_v22 }
 0x695   :  { %1741 = vrcp.f32 %v546_v23 }
 0x69f   :  { %v1742_v24 = vpop.eup %1741 }
 0x704   :  { %v566_v27 = vpop.permute.xlu1 %565 }
 0x705   :  { %v568_v28 = vmul.f32 %v1742_v24, %v566_v27 }
 0x707   :  { %570 = vst.msk [vmem:[#allocation3 + $0x8] sm:$0xff] %vm225_vm1, %v568_v28  ;;  %1455 = vmatmul.mubr.msk.f32.vlgmr.msra.gmra.mrb[0].mxu0 %vm225_vm1, %v568_v28 }
 0x708   :  { %1594 = vmatpush1.bf16.msra.mxu0 %v1878_v9  ;;  %756 = vmatprep.mubr.f32.mxu0 %v1815_v2 }
 0x709   :  { %1596 = vmatprep.subr.bf16.mxu0 %v1894_v14 }
 0x70c   :  { %1598 = vmatpush1.bf16.msra.mxu0 %v1900_v16 }
 0x70d   :  { %1600 = vmatprep.subr.bf16.mxu0 %v1910_v19 }
 0x70e   :  { %v1263_v29 = vld [vmem:[#allocation3 + $0x8] sm:$0xff] }
 0x70f   :  { %1516 = vmatmul.mubr.msk.f32.vlgmr.msra.gmra.mrb[18].mxu1 %vm225_vm1, %v1263_v29 }
 0x710   :  { %1602 = vmatpush1.bf16.msra.mxu0 %v1932_v25 }
 0x711   :  { %1604 = vmatprep.subr.bf16.mxu0 %v1935_v26 }
 0x714   :  { %1606 = vmatpush1.bf16.msra.mxu0 %v1951_v30 }
 0x715   :  { %1608 = vmatprep.subr.bf16.mxu0 %v1872_v7 }
 0x7da   :  { %v645_v31 = vpop.f32.mrb[0].mxu0 }
 0x7db   :  { %v650_v32 = vadd.f32 %v645_v31, %v2003_v37  ;;  %v647_v33 = vpop.f32.mrb[1].mxu0 }
 0x7dc   :  { %v651_v34 = vadd.f32 %v647_v33, %v2005_v38 }
 0x7dd   :  { %v1456_v38 = vmul.f32 -1.442695, %v650_v32 }
 0x7de   :  { %1743 = vtanh.f32 %v651_v34  ;;  %v1457_v61 = vmul.f32 -1.442695, %v651_v34 }
 0x7df   :  { %1745 = vpow2.f32 %v1456_v38 }
 0x7e2   :  { %v1517_v36 = vpop.f32.mrb[18].mxu1 }
 0x7e3   :  { %v1379_v49 = vadd.f32 %v1517_v36, %v2103_v35  ;;  %v1373_v50 = vpop.f32.mrb[19].mxu1 }
 0x7e4   :  { %v1374_v51 = vadd.f32 %v2103_v35, %v1373_v50 }
 0x7e5   :  { %1413 = vst [vmem:[%s2236_s5 + $0x8] sm:$0xff] %v1379_v49 }
 0x7e6   :  { %1412 = vst [vmem:[%s2236_s5] sm:$0xff] %v1374_v51 }
 0x7e8   :  { %v1744_v37 = vpop.eup %1743 }
 0x7e9   :  { %667 = vrot.lane.b32.xlu0 %v1744_v37, %s1816_s0  ;;  %v1746_v52 = vpop.eup %1745 }
 0x7ea   :  { %v658_v53 = vadd.f32 1.0, %v1746_v52 }
 0x7ec   :  { %1747 = vrcp.f32 %v658_v53 }
 0x7f6   :  { %v1748_v54 = vpop.eup %1747 }
 0x7f7   :  { %v665_v57 = vmul.f32 %v1748_v54, %v562_v12 }
 0x85b   :  { %v668_v55 = vpop.permute.xlu0 %667 }
 0x85c   :  { %v670_v56 = vmul.f32 %v1748_v54, %v668_v55 }
 0x85e   :  { %672 = vrot.lane.b32.xlu1 %v670_v56, %s1816_s0 }
 0x8d0   :  { %v673_v58 = vpop.permute.xlu1 %672 }
 0x8d1   :  { %v675_v59 = vadd.f32 %v673_v58, %v665_v57 }
 0x8d3   :  { %1749 = vtanh.f32 %v675_v59 }
 0x8d4   :  { %1751 = vpow2.f32 %v1457_v61 }
 0x8dd   :  { %v1750_v60 = vpop.eup %1749 }
 0x8de   :  { %678 = vrot.lane.b32.xlu0 %v1750_v60, %s1816_s0  ;;  %v1752_v62 = vpop.eup %1751 }
 0x8df   :  { %v659_v63 = vadd.f32 1.0, %v1752_v62 }
 0x8e1   :  { %1753 = vrcp.f32 %v659_v63 }
 0x8eb   :  { %v1754_v0 = vpop.eup %1753 }
 0x950   :  { %v679_v1 = vpop.permute.xlu0 %678 }
 0x951   :  { %v681_v3 = vmul.f32 %v1754_v0, %v679_v1 }
 0x953   :  { %683 = vst.msk [vmem:[#allocation3 + $0x10] sm:$0xff] %vm225_vm1, %v681_v3  ;;  %1458 = vmatmul.mubr.msk.f32.vlgmr.msra.gmra.mrb[2].mxu0 %vm225_vm1, %v681_v3 }
 0x954   :  { %1610 = vmatpush1.bf16.msra.mxu0 %v1878_v9  ;;  %869 = vmatprep.mubr.f32.mxu0 %v1815_v2 }
 0x955   :  { %1612 = vmatprep.subr.bf16.mxu0 %v1894_v14 }
 0x958   :  { %1614 = vmatpush1.bf16.msra.mxu0 %v1900_v16 }
 0x959   :  { %1616 = vmatprep.subr.bf16.mxu0 %v1910_v19 }
 0x95a   :  { %v1264_v5 = vld [vmem:[#allocation3 + $0x10] sm:$0xff] }
 0x95b   :  { %1518 = vmatprep.mubr.msk.f32.mxu1 %vm225_vm1, %v1264_v5 }
 0x95c   :  { %1618 = vmatpush1.bf16.msra.mxu0 %v1932_v25 }
 0x95d   :  { %1620 = vmatprep.subr.bf16.mxu0 %v1935_v26 }
 0x960   :  { %1622 = vmatpush1.bf16.msra.mxu0 %v1951_v30 }
 0x961   :  { %1624 = vmatprep.subr.bf16.mxu0 %v1872_v7 }
 0xa26   :  { %v758_v6 = vpop.f32.mrb[2].mxu0 }
 0xa27   :  { %v763_v8 = vadd.f32 %v758_v6, %v2007_v39  ;;  %v760_v10 = vpop.f32.mrb[3].mxu0 }
 0xa28   :  { %v764_v11 = vadd.f32 %v760_v10, %v2009_v40 }
 0xa29   :  { %v1459_v13 = vmul.f32 -1.442695, %v763_v8 }
 0xa2a   :  { %1755 = vtanh.f32 %v764_v11  ;;  %v1460_v40 = vmul.f32 -1.442695, %v764_v11 }
 0xa2b   :  { %1757 = vpow2.f32 %v1459_v13 }
 0xa34   :  { %v1756_v12 = vpop.eup %1755 }
 0xa35   :  { %780 = vrot.lane.b32.xlu1 %v1756_v12, %s1816_s0  ;;  %v1758_v15 = vpop.eup %1757 }
 0xa36   :  { %v771_v17 = vadd.f32 1.0, %v1758_v15 }
 0xa38   :  { %1759 = vrcp.f32 %v771_v17 }
 0xa42   :  { %v1760_v18 = vpop.eup %1759 }
 0xa43   :  { %v778_v22 = vmul.f32 %v1760_v18, %v675_v59 }
 0xaa7   :  { %v781_v20 = vpop.permute.xlu1 %780 }
 0xaa8   :  { %v783_v21 = vmul.f32 %v1760_v18, %v781_v20 }
 0xaaa   :  { %785 = vrot.lane.b32.xlu0 %v783_v21, %s1816_s0 }
 0xb1c   :  { %v786_v23 = vpop.permute.xlu0 %785 }
 0xb1d   :  { %v788_v39 = vadd.f32 %v786_v23, %v778_v22 }
 0xb1f   :  { %1761 = vtanh.f32 %v788_v39 }
 0xb20   :  { %1763 = vpow2.f32 %v1460_v40 }
 0xb29   :  { %v1762_v24 = vpop.eup %1761 }
 0xb2a   :  { %791 = vrot.lane.b32.xlu1 %v1762_v24, %s1816_s0  ;;  %v1764_v27 = vpop.eup %1763 }
 0xb2b   :  { %v772_v28 = vadd.f32 1.0, %v1764_v27 }
 0xb2d   :  { %1765 = vrcp.f32 %v772_v28 }
 0xb37   :  { %v1766_v29 = vpop.eup %1765 }
 0xb9c   :  { %v792_v31 = vpop.permute.xlu1 %791 }
 0xb9d   :  { %v794_v32 = vmul.f32 %v1766_v29, %v792_v31 }
 0xb9f   :  { %796 = vst.msk [vmem:[#allocation3 + $0x18] sm:$0xff] %vm225_vm1, %v794_v32  ;;  %1461 = vmatmul.mubr.msk.f32.vlgmr.msra.gmra.mrb[4].mxu0 %vm225_vm1, %v794_v32 }
 0xba0   :  { %1626 = vmatpush1.bf16.msra.mxu0 %v1878_v9  ;;  %982 = vmatprep.mubr.f32.mxu0 %v1815_v2 }
 0xba1   :  { %1628 = vmatprep.subr.bf16.mxu0 %v1894_v14 }
 0xba4   :  { %1630 = vmatpush1.bf16.msra.mxu0 %v1900_v16 }
 0xba5   :  { %1632 = vmatprep.subr.bf16.mxu0 %v1910_v19 }
 0xba6   :  { %v1265_v33 = vld [vmem:[#allocation3 + $0x18] sm:$0xff] }
 0xba7   :  { %1519 = vmatmul.mubr.msk.f32.gmra.mrb[20].mxu1 %vm225_vm1, %v1265_v33 }
 0xba8   :  { %1634 = vmatpush1.bf16.msra.mxu0 %v1932_v25 }
 0xba9   :  { %1636 = vmatprep.subr.bf16.mxu0 %v1935_v26 }
 0xbac   :  { %1638 = vmatpush1.bf16.msra.mxu0 %v1951_v30 }
 0xbad   :  { %1640 = vmatprep.subr.bf16.mxu0 %v1872_v7 }
 0xc72   :  { %v871_v34 = vpop.f32.mrb[4].mxu0 }
 0xc73   :  { %v876_v36 = vadd.f32 %v871_v34, %v2011_v41  ;;  %v873_v49 = vpop.f32.mrb[5].mxu0 }
 0xc74   :  { %v877_v50 = vadd.f32 %v873_v49, %v2013_v42 }
 0xc75   :  { %v1462_v41 = vmul.f32 -1.442695, %v876_v36 }
 0xc76   :  { %1767 = vtanh.f32 %v877_v50  ;;  %v1463_v62 = vmul.f32 -1.442695, %v877_v50 }
 0xc77   :  { %1769 = vpow2.f32 %v1462_v41 }
 0xc7a   :  { %v1520_v51 = vpop.f32.mrb[20].mxu1 }
 0xc7b   :  { %v1389_v37 = vadd.f32 %v1520_v51, %v2103_v35  ;;  %v1383_v38 = vpop.f32.mrb[21].mxu1 }
 0xc7c   :  { %v1384_v52 = vadd.f32 %v2103_v35, %v1383_v38 }
 0xc7d   :  { %1415 = vst [vmem:[%s2236_s5 + $0x18] sm:$0xff] %v1389_v37 }
 0xc7e   :  { %1414 = vst [vmem:[%s2236_s5 + $0x10] sm:$0xff] %v1384_v52 }
 0xc80   :  { %v1768_v53 = vpop.eup %1767 }
 0xc81   :  { %893 = vrot.lane.b32.xlu0 %v1768_v53, %s1816_s0  ;;  %v1770_v42 = vpop.eup %1769 }
 0xc82   :  { %v884_v54 = vadd.f32 1.0, %v1770_v42 }
 0xc84   :  { %1771 = vrcp.f32 %v884_v54 }
 0xc8e   :  { %v1772_v55 = vpop.eup %1771 }
 0xc8f   :  { %v891_v58 = vmul.f32 %v1772_v55, %v788_v39 }
 0xcf3   :  { %v894_v56 = vpop.permute.xlu0 %893 }
 0xcf4   :  { %v896_v57 = vmul.f32 %v1772_v55, %v894_v56 }
 0xcf6   :  { %898 = vrot.lane.b32.xlu1 %v896_v57, %s1816_s0 }
 0xd68   :  { %v899_v59 = vpop.permute.xlu1 %898 }
 0xd69   :  { %v901_v60 = vadd.f32 %v899_v59, %v891_v58 }
 0xd6b   :  { %1773 = vtanh.f32 %v901_v60 }
 0xd6c   :  { %1775 = vpow2.f32 %v1463_v62 }
 0xd75   :  { %v1774_v61 = vpop.eup %1773 }
 0xd76   :  { %904 = vrot.lane.b32.xlu0 %v1774_v61, %s1816_s0  ;;  %v1776_v63 = vpop.eup %1775 }
 0xd77   :  { %v885_v0 = vadd.f32 1.0, %v1776_v63 }
 0xd79   :  { %1777 = vrcp.f32 %v885_v0 }
 0xd83   :  { %v1778_v1 = vpop.eup %1777 }
 0xde8   :  { %v905_v3 = vpop.permute.xlu0 %904 }
 0xde9   :  { %v907_v5 = vmul.f32 %v1778_v1, %v905_v3 }
 0xdeb   :  { %909 = vst.msk [vmem:[#allocation3 + $0x20] sm:$0xff] %vm225_vm1, %v907_v5  ;;  %1464 = vmatmul.mubr.msk.f32.vlgmr.msra.gmra.mrb[6].mxu0 %vm225_vm1, %v907_v5 }
 0xdec   :  { %1642 = vmatpush1.bf16.msra.mxu0 %v1878_v9  ;;  %1095 = vmatprep.mubr.f32.mxu0 %v1815_v2 }
 0xded   :  { %1644 = vmatprep.subr.bf16.mxu0 %v1894_v14 }
 0xdf0   :  { %1646 = vmatpush1.bf16.msra.mxu0 %v1900_v16 }
 0xdf1   :  { %1648 = vmatprep.subr.bf16.mxu0 %v1910_v19 }
 0xdf2   :  { %v1266_v6 = vld [vmem:[#allocation3 + $0x20] sm:$0xff] }
 0xdf3   :  { %1521 = vmatprep.mubr.msk.f32.mxu1 %vm225_vm1, %v1266_v6 }
 0xdf4   :  { %1650 = vmatpush1.bf16.msra.mxu0 %v1932_v25 }
 0xdf5   :  { %1652 = vmatprep.subr.bf16.mxu0 %v1935_v26 }
 0xdf8   :  { %1654 = vmatpush1.bf16.msra.mxu0 %v1951_v30 }
 0xdf9   :  { %1656 = vmatprep.subr.bf16.mxu0 %v1872_v7 }
 0xebe   :  { %v984_v8 = vpop.f32.mrb[6].mxu0 }
 0xebf   :  { %v989_v10 = vadd.f32 %v984_v8, %v2015_v43  ;;  %v986_v11 = vpop.f32.mrb[7].mxu0 }
 0xec0   :  { %v990_v12 = vadd.f32 %v986_v11, %v2017_v44 }
 0xec1   :  { %v1465_v15 = vmul.f32 -1.442695, %v989_v10 }
 0xec2   :  { %1779 = vtanh.f32 %v990_v12  ;;  %v1466_v44 = vmul.f32 -1.442695, %v990_v12 }
 0xec3   :  { %1781 = vpow2.f32 %v1465_v15 }
 0xecc   :  { %v1780_v13 = vpop.eup %1779 }
 0xecd   :  { %1006 = vrot.lane.b32.xlu1 %v1780_v13, %s1816_s0  ;;  %v1782_v17 = vpop.eup %1781 }
 0xece   :  { %v997_v18 = vadd.f32 1.0, %v1782_v17 }
 0xed0   :  { %1783 = vrcp.f32 %v997_v18 }
 0xeda   :  { %v1784_v20 = vpop.eup %1783 }
 0xedb   :  { %v1004_v7 = vmul.f32 %v1784_v20, %v901_v60 }
 0xf3f   :  { %v1007_v21 = vpop.permute.xlu1 %1006 }
 0xf40   :  { %v1009_v22 = vmul.f32 %v1784_v20, %v1007_v21 }
 0xf42   :  { %1011 = vrot.lane.b32.xlu0 %v1009_v22, %s1816_s0 }
 0xfb4   :  { %v1012_v23 = vpop.permute.xlu0 %1011 }
 0xfb5   :  { %v1014_v43 = vadd.f32 %v1012_v23, %v1004_v7 }
 0xfb7   :  { %1785 = vtanh.f32 %v1014_v43 }
 0xfb8   :  { %1787 = vpow2.f32 %v1466_v44 }
 0xfc1   :  { %v1786_v39 = vpop.eup %1785 }
 0xfc2   :  { %1017 = vrot.lane.b32.xlu1 %v1786_v39, %s1816_s0  ;;  %v1788_v24 = vpop.eup %1787 }
 0xfc3   :  { %v998_v40 = vadd.f32 1.0, %v1788_v24 }
 0xfc5   :  { %1789 = vrcp.f32 %v998_v40 }
 0xfcf   :  { %v1790_v27 = vpop.eup %1789 }
0x1034   :  { %v1018_v28 = vpop.permute.xlu1 %1017 }
0x1035   :  { %v1020_v29 = vmul.f32 %v1790_v27, %v1018_v28 }
0x1037   :  { %1022 = vst.msk [vmem:[#allocation3 + $0x28] sm:$0xff] %vm225_vm1, %v1020_v29  ;;  %1467 = vmatmul.mubr.msk.f32.vlgmr.msra.gmra.mrb[8].mxu0 %vm225_vm1, %v1020_v29 }
0x1038   :  { %1658 = vmatpush1.bf16.msra.mxu0 %v1878_v9  ;;  %1208 = vmatprep.mubr.f32.mxu0 %v1815_v2 }
0x1039   :  { %1660 = vmatprep.subr.bf16.mxu0 %v1894_v14 }
0x103c   :  { %1662 = vmatpush1.bf16.msra.mxu0 %v1900_v16 }
0x103d   :  { %1664 = vmatprep.subr.bf16.mxu0 %v1910_v19 }
0x103e   :  { %v1267_v31 = vld [vmem:[#allocation3 + $0x28] sm:$0xff] }
0x103f   :  { %1522 = vmatmul.mubr.msk.f32.gmra.mrb[22].mxu1 %vm225_vm1, %v1267_v31 }
0x1040   :  { %1666 = vmatpush1.bf16.msra.mxu0 %v1932_v25 }
0x1041   :  { %1668 = vmatprep.subr.bf16.mxu0 %v1935_v26 }
0x1044   :  { %1670 = vmatpush1.bf16.msra.mxu0 %v1951_v30 }
0x110a   :  { %v1097_v32 = vpop.f32.mrb[8].mxu0 }
0x110b   :  { %v1102_v9 = vadd.f32 %v1097_v32, %v2019_v45  ;;  %v1099_v33 = vpop.f32.mrb[9].mxu0 }
0x110c   :  { %v1103_v2 = vadd.f32 %v1099_v33, %v2021_v46 }
0x110d   :  { %v1468_v26 = vmul.f32 -1.442695, %v1102_v9 }
0x110e   :  { %1791 = vtanh.f32 %v1103_v2  ;;  %v1469_v52 = vmul.f32 -1.442695, %v1103_v2 }
0x110f   :  { %1793 = vpow2.f32 %v1468_v26 }
0x1112   :  { %v1523_v14 = vpop.f32.mrb[22].mxu1 }
0x1113   :  { %v1399_v16 = vadd.f32 %v1523_v14, %v2103_v35  ;;  %v1393_v19 = vpop.f32.mrb[23].mxu1 }
0x1114   :  { %v1394_v34 = vadd.f32 %v2103_v35, %v1393_v19 }
0x1115   :  { %1417 = vst [vmem:[%s2236_s5 + $0x28] sm:$0xff] %v1399_v16 }
0x1116   :  { %1416 = vst [vmem:[%s2236_s5 + $0x20] sm:$0xff] %v1394_v34 }
0x1118   :  { %v1792_v25 = vpop.eup %1791 }
0x1119   :  { %1119 = vrot.lane.b32.xlu0 %v1792_v25, %s1816_s0  ;;  %v1794_v30 = vpop.eup %1793 }
0x111a   :  { %v1110_v45 = vadd.f32 1.0, %v1794_v30 }
0x111c   :  { %1795 = vrcp.f32 %v1110_v45 }
0x1126   :  { %v1796_v46 = vpop.eup %1795 }
0x1127   :  { %v1117_v50 = vmul.f32 %v1796_v46, %v1014_v43 }
0x118b   :  { %v1120_v36 = vpop.permute.xlu0 %1119 }
0x118c   :  { %v1122_v49 = vmul.f32 %v1796_v46, %v1120_v36 }
0x118e   :  { %1124 = vrot.lane.b32.xlu1 %v1122_v49, %s1816_s0 }
0x1200   :  { %v1125_v51 = vpop.permute.xlu1 %1124 }
0x1201   :  { %v1127_v37 = vadd.f32 %v1125_v51, %v1117_v50 }
0x1203   :  { %1797 = vtanh.f32 %v1127_v37 }
0x1204   :  { %1799 = vpow2.f32 %v1469_v52 }
0x120d   :  { %v1798_v38 = vpop.eup %1797 }
0x120e   :  { %1130 = vrot.lane.b32.xlu0 %v1798_v38, %s1816_s0  ;;  %v1800_v53 = vpop.eup %1799 }
0x120f   :  { %v1111_v41 = vadd.f32 1.0, %v1800_v53 }
0x1211   :  { %1801 = vrcp.f32 %v1111_v41 }
0x121b   :  { %v1802_v42 = vpop.eup %1801 }
0x1280   :  { %v1131_v54 = vpop.permute.xlu0 %1130 }
0x1281   :  { %v1133_v55 = vmul.f32 %v1802_v42, %v1131_v54 }
0x1283   :  { %1135 = vst.msk [vmem:[#allocation3 + $0x30] sm:$0xff] %vm225_vm1, %v1133_v55  ;;  %1470 = vmatmul.mubr.msk.f32.vlgmr.msra.gmra.mrb[10].mxu0 %vm225_vm1, %v1133_v55 }
0x128a   :  { %v1268_v56 = vld [vmem:[#allocation3 + $0x30] sm:$0xff] }
0x128b   :  { %1524 = vmatprep.mubr.msk.f32.mxu1 %vm225_vm1, %v1268_v56 }
0x1356   :  { %v1210_v57 = vpop.f32.mrb[10].mxu0 }
0x1357   :  { %v1215_v58 = vadd.f32 %v1210_v57, %v2023_v47  ;;  %v1212_v59 = vpop.f32.mrb[11].mxu0 }
0x1358   :  { %v1216_v60 = vadd.f32 %v1212_v59, %v2025_v48 }
0x1359   :  { %v1471_v62 = vmul.f32 -1.442695, %v1215_v58 }
0x135a   :  { %1803 = vtanh.f32 %v1216_v60  ;;  %v1472_v10 = vmul.f32 -1.442695, %v1216_v60 }
0x135b   :  { %1805 = vpow2.f32 %v1471_v62 }
0x1364   :  { %v1804_v61 = vpop.eup %1803 }
0x1365   :  { %1232 = vrot.lane.b32.xlu1 %v1804_v61, %s1816_s0  ;;  %v1806_v63 = vpop.eup %1805 }
0x1366   :  { %v1223_v0 = vadd.f32 1.0, %v1806_v63 }
0x1368   :  { %1807 = vrcp.f32 %v1223_v0 }
0x1372   :  { %v1808_v1 = vpop.eup %1807 }
0x1373   :  { %v1230_v47 = vmul.f32 %v1808_v1, %v1127_v37 }
0x13d7   :  { %v1233_v3 = vpop.permute.xlu1 %1232 }
0x13d8   :  { %v1235_v5 = vmul.f32 %v1808_v1, %v1233_v3 }
0x13da   :  { %1237 = vrot.lane.b32.xlu0 %v1235_v5, %s1816_s0 }
0x13de   :  { %1249 = vrot.lane.b32.xlu0 %v1127_v37, %s1816_s0 }
0x144c   :  { %v1238_v6 = vpop.permute.xlu0 %1237 }
0x144d   :  { %v1240_v8 = vadd.f32 %v1238_v6, %v1230_v47 }
0x144f   :  { %1809 = vtanh.f32 %v1240_v8 }
0x1450   :  { %1811 = vpow2.f32 %v1472_v10  ;;  %v1250_v20 = vpop.permute.xlu0 %1249 }
0x1459   :  { %v1810_v48 = vpop.eup %1809 }
0x145a   :  { %1243 = vrot.lane.b32.xlu1 %v1810_v48, %s1816_s0  ;;  %v1812_v11 = vpop.eup %1811 }
0x145b   :  { %v1224_v12 = vadd.f32 1.0, %v1812_v11 }
0x145d   :  { %1813 = vrcp.f32 %v1224_v12 }
0x145e   :  { %1253 = vrot.lane.b32.xlu1 %v1240_v8, %s1816_s0 }
0x1467   :  { %v1814_v13 = vpop.eup %1813 }
0x14cc   :  { %v1244_v15 = vpop.permute.xlu1 %1243 }
0x14cd   :  { %v1246_v17 = vmul.f32 %v1814_v13, %v1244_v15 }
0x14cf   :  { %v1247_v18 = vsel %vm216_vm2, %v1133_v55, %v1246_v17 }
0x14d0   :  { %1258 = vst.msk [vmem:[#allocation3 + $0x38] sm:$0xff] %vm225_vm1, %v1247_v18  ;;  %v1254_v21 = vpop.permute.xlu1 %1253  ;;  %1259 = vst.msk [vmem:[%s2237_s6] sm:$0xff] %vm225_vm1, %v1247_v18 }
0x14d1   :  { %v1256_v22 = vsel %vm216_vm2, %v1250_v20, %v1254_v21 }
0x14d2   :  { %1473 = vst.msk [vmem:[%s2237_s6 + $0x8] sm:$0xff] %vm225_vm1, %v1256_v22 }
0x14d7   :  { %v1269_v7 = vld [vmem:[#allocation3 + $0x38] sm:$0xff] }
0x14d8   :  { %1525 = vmatmul.mubr.msk.f32.gmra.mrb[24].mxu1 %vm225_vm1, %v1269_v7 }
0x15ab   :  { %v1526_v23 = vpop.f32.mrb[24].mxu1 }
0x15ac   :  { %v1409_v43 = vadd.f32 %v1526_v23, %v2103_v35  ;;  %v1403_v39 = vpop.f32.mrb[25].mxu1 }
0x15ad   :  { %v1404_v44 = vadd.f32 %v2103_v35, %v1403_v39 }
0x15ae   :  { %1419 = vst [vmem:[%s2236_s5 + $0x38] sm:$0xff] %v1409_v43 }
0x15af   :  { %1418 = vst [vmem:[%s2236_s5 + $0x30] sm:$0xff] %v1404_v44 }

</bundles_post_ra>
